<compile_context>
chip_gen: v7x
topology: tpu7x:2x2x1
jax: 0.10.0
libtpu: 0.0.40
codegen_flags: <defaults>
</compile_context>

<pallas_src>
import numbers

import jax
import jax.numpy as jnp
from jax.experimental import pallas as pl
from jax.experimental.pallas import tpu as pltpu


def _static_focal_factor(d, gamma):
    """(1 - pt)**gamma with a static Python gamma; d = max(1 - pt, 0)."""
    g = float(gamma)
    if g == 0.0:
        return jnp.ones_like(d)
    if g == int(g) and 1.0 <= g <= 8.0:        # gamma=2.0 default -> d*d (VPU only)
        ff = d
        for _ in range(int(g) - 1):
            ff = ff * d
        return ff
    return jnp.where(d > 0.0, jnp.exp(g * jnp.log(jnp.maximum(d, 1e-30))), 0.0)


def _make_focal_kernel(tb, c, b_total, has_cw, static_alpha_gamma):
    """Build the kernel body for one (tb, c) batch tile."""
    ragged = (b_total % tb) != 0   # last grid step has out-of-bounds rows

    def kernel(*refs):
        idx = 0
        if static_alpha_gamma is None:
            params_ref = refs[idx]; idx += 1    # SMEM (2,) f32: [alpha, gamma]
        logits_ref = refs[idx]; idx += 1        # VMEM (tb, c)
        targets_ref = refs[idx]; idx += 1       # VMEM (tb, 1) int32
        if has_cw:
            cw_ref = refs[idx]; idx += 1        # VMEM (1, c) f32, grid-resident
        out_ref = refs[idx]                     # VMEM (1, 8, 128) f32 partial sum

        tgt = targets_ref[...]                  # (tb, 1) int32
        class_ids = jax.lax.broadcasted_iota(jnp.int32, (tb, c), 1)
        sel = class_ids == tgt                  # (tb, c) target mask (bool)

        logits = logits_ref[...].astype(jnp.float32)

        row_valid = None
        if ragged:
            row_ids = (pl.program_id(0) * tb
                       + jax.lax.broadcasted_iota(jnp.int32, (tb, 1), 0))
            row_valid = row_ids < b_total       # (tb, 1)
            # OOB rows of the last partial block hold garbage (possibly
            # inf/NaN) -> force finite BEFORE the exp / lse.
            logits = jnp.where(row_valid, logits, 0.0)

        # Numerically stable log-softmax of the target class with the gather
        # fused into the shifted-logits pass (no f32 one-hot tensor).
        m = jnp.max(logits, axis=-1, keepdims=True)                    # (tb, 1)
        shifted = logits - m
        logit_t = jnp.sum(jnp.where(sel, shifted, 0.0), axis=-1, keepdims=True)
        lse = jnp.log(jnp.sum(jnp.exp(shifted), axis=-1, keepdims=True))
        logp_t = logit_t - lse                                         # (tb, 1)

        if has_cw:
            # In-kernel class-weight gather (same select mask, lane reduce).
            w_t = jnp.sum(jnp.where(sel, cw_ref[...], 0.0),
                          axis=-1, keepdims=True)
            ce = -w_t * logp_t
        else:
            ce = -logp_t
        # NOTE: pt = exp(-ce) with class weights gives pt = p_t ** w_t, i.e.
        # the weighted-CE definition — matches the PyTorch reference exactly.
        pt = jnp.exp(-ce)
        d = jnp.maximum(1.0 - pt, 0.0)          # clamp: avoids log(<=0) NaNs

        if static_alpha_gamma is not None:
            alpha, gamma = static_alpha_gamma
            focal = jnp.float32(alpha) * _static_focal_factor(d, gamma) * ce
        else:
            alpha = params_ref[0]
            gamma = params_ref[1]
            ff = jnp.where(
                d > 0.0,
                jnp.exp(gamma * jnp.log(jnp.maximum(d, 1e-30))),
                jnp.where(gamma == 0.0, jnp.float32(1.0), jnp.float32(0.0)))
            focal = alpha * ff * ce

        if ragged:
            focal = jnp.where(row_valid, focal, 0.0)   # zero OOB rows

        # Lane-dense partial sum for this tile (unmasked full-vreg store).
        out_ref[...] = jnp.broadcast_to(jnp.sum(focal), (1, 8, 128))

    return kernel


def _vmem_capacity_bytes():
    """Best-effort physical VMEM size; defaults to 128 MiB (v5e/v6e class)."""
    try:
        info = pltpu.get_tpu_info()
        v = getattr(info, "vmem_capacity_bytes", None)
        if v:
            return int(v)
    except Exception:
        pass
    return 128 * 1024 * 1024


def _pick_block_rows(b, c, block_rows, vmem_bytes):
    small_vmem = vmem_bytes <= 64 * 1024 * 1024     # v7x-class chips

    if block_rows is not None:
        tb = max(8, (int(block_rows) // 8) * 8)
    else:
        # f32-working-set tile target: big enough to amortize the ~0.35 us
        # per-grid-step overhead, small enough that the double-buffered input
        # plus full-tile f32 temps fit the per-generation VMEM budget.
        target_bytes = (4 if small_vmem else 8) * 1024 * 1024
        row_cap = 2048 if small_vmem else 4096
        tb = target_bytes // max(c * 4, 1)
        tb = max(8, min(row_cap, (tb // 8) * 8))
        if small_vmem:
            # v7x megacore: make sure the 'parallel' batch axis has >= 2
            # (ideally 4) grid steps so both TensorCores get work.
            want_tiles = 4 if b >= 32 else (2 if b >= 16 else 1)
            if want_tiles > 1:
                tb_cap = -(-b // want_tiles)          # ceil(b / want_tiles)
                tb_cap = max(8, -(-tb_cap // 8) * 8)  # round up to mult of 8
                tb = min(tb, tb_cap)

    if tb >= b:
        # Clamp the tile to the batch; prefer rounding down (extra partial
        # tile handled in-kernel) over a block larger than the array.
        tb = (b // 8) * 8 if b >= 8 else 8
    return tb


def _pick_vmem_limit(vmem_bytes):
    if vmem_bytes <= 64 * 1024 * 1024:
        return 56 * 1024 * 1024      # v7x: 64 MiB physical, leave headroom
    return 100 * 1024 * 1024         # v5e/v6e: 128 MiB physical


def focal_loss(logits, targets, alpha, gamma, class_weights=None, *,
               block_rows=None):
    """Pallas TPU focal loss (forward).

    logits:  (B, C) float (f32 or bf16)
    targets: (B,)   integer labels
    alpha, gamma: Python numbers (static fast path) or scalar jax arrays
    class_weights: optional (C,) float
    returns: scalar float32 (mean focal loss; PyTorch semantics: divide by B)
    """
    b, c = logits.shape
    targets = targets.astype(jnp.int32)

    static_alpha_gamma = None
    if isinstance(alpha, numbers.Number) and isinstance(gamma, numbers.Number):
        static_alpha_gamma = (float(alpha), float(gamma))

    vmem_bytes = _vmem_capacity_bytes()
    tb = _pick_block_rows(b, c, block_rows, vmem_bytes)
    num_tiles = -(-b // tb)

    has_cw = class_weights is not None

    in_specs = []
    operands = []
    if static_alpha_gamma is None:
        params = jnp.concatenate([
            jnp.asarray(alpha, jnp.float32).reshape(1),
            jnp.asarray(gamma, jnp.float32).reshape(1)])
        in_specs.append(pl.BlockSpec(memory_space=pltpu.MemorySpace.SMEM))
        operands.append(params)
    in_specs.append(pl.BlockSpec((tb, c), lambda i: (i, 0)))
    operands.append(logits)                       # no jnp.pad: ragged handled in-kernel
    in_specs.append(pl.BlockSpec((tb, 1), lambda i: (i, 0)))
    operands.append(targets.reshape(b, 1))
    if has_cw:
        cw = jnp.asarray(class_weights, jnp.float32).reshape(1, c)
        in_specs.append(pl.BlockSpec((1, c), lambda i: (0, 0)))   # grid-resident
        operands.append(cw)

    partials = pl.pallas_call(
        _make_focal_kernel(tb, c, b, has_cw, static_alpha_gamma),
        grid=(num_tiles,),
        in_specs=in_specs,
        out_specs=pl.BlockSpec((1, 8, 128), lambda i: (i, 0, 0)),
        out_shape=jax.ShapeDtypeStruct((num_tiles, 8, 128), jnp.float32),
        compiler_params=pltpu.CompilerParams(
            dimension_semantics=("parallel",),
            vmem_limit_bytes=_pick_vmem_limit(vmem_bytes)),
    )(*operands)

    # NOTE: each (8,128) block holds the same scalar broadcast — read [0, 0];
    # do NOT "simplify" to jnp.sum(partials).
    return jnp.sum(partials[:, 0, 0]) / jnp.float32(b)


def _reference_focal_loss(logits, targets, alpha, gamma, class_weights=None):
    """Pure-JAX reference matching the PyTorch module semantics."""
    b, c = logits.shape
    if class_weights is None:
        class_weights = jnp.ones((c,), jnp.float32)
    logp = jax.nn.log_softmax(logits.astype(jnp.float32), axis=-1)
    logp_t = jnp.take_along_axis(logp, targets[:, None], axis=-1)[:, 0]
    w_t = jnp.asarray(class_weights, jnp.float32)[targets]
    ce = -w_t * logp_t
    pt = jnp.exp(-ce)
    return jnp.mean(alpha * (1.0 - pt) ** gamma * ce)


if __name__ == "__main__":
    key = jax.random.PRNGKey(0)
    k1, k2, k3, k4 = jax.random.split(key, 4)

    # Test 1: module defaults (alpha=1.0, gamma=2.0 static, no class weights),
    # exact single tile.
    B, C = 8, 128
    logits = jax.random.normal(k1, (B, C), dtype=jnp.float32)
    targets = jax.random.randint(k2, (B,), 0, C, dtype=jnp.int32)
    loss = jax.block_until_ready(focal_loss(logits, targets, 1.0, 2.0, None))
    ref = _reference_focal_loss(logits, targets, 1.0, 2.0, None)
    assert jnp.allclose(loss, ref, rtol=1e-5, atol=1e-6), (loss, ref)

    # Test 2: learnable-style traced alpha/gamma (SMEM params), in-kernel class
    # weights, ragged batch with a forced multi-tile grid (block_rows=8 ->
    # 3 tiles, last partial tile masked in-kernel — no wrapper padding).
    B2, C2 = 20, 32
    logits2 = jax.random.normal(k3, (B2, C2), dtype=jnp.float32)
    targets2 = jax.random.randint(k4, (B2,), 0, C2, dtype=jnp.int32)
    cw = jnp.linspace(0.5, 1.5, C2, dtype=jnp.float32)
    alpha_t = jnp.asarray(0.75, jnp.float32)
    gamma_t = jnp.asarray(1.5, jnp.float32)
    loss2 = jax.block_until_ready(
        focal_loss(logits2, targets2, alpha_t, gamma_t, cw, block_rows=8))
    ref2 = _reference_focal_loss(logits2, targets2, 0.75, 1.5, cw)
    assert jnp.allclose(loss2, ref2, rtol=1e-4, atol=1e-6), (loss2, ref2)

    # Test 3: bf16 logits DMA path (halved HBM bytes), f32 math inside kernel.
    logits_bf16 = logits.astype(jnp.bfloat16)
    loss3 = jax.block_until_ready(focal_loss(logits_bf16, targets, 1.0, 2.0, None))
    ref3 = _reference_focal_loss(logits_bf16.astype(jnp.float32), targets,
                                 1.0, 2.0, None)
    assert jnp.allclose(loss3, ref3, rtol=1e-4, atol=1e-5), (loss3, ref3)

    # Test 4: ragged batch with default (auto) tiling — exercises the
    # no-padding path and the in-kernel OOB row mask on the last tile.
    B4, C4 = 20, 128
    logits4 = jax.random.normal(k3, (B4, C4), dtype=jnp.float32)
    targets4 = jax.random.randint(k4, (B4,), 0, C4, dtype=jnp.int32)
    loss4 = jax.block_until_ready(focal_loss(logits4, targets4, 1.0, 2.0, None))
    ref4 = _reference_focal_loss(logits4, targets4, 1.0, 2.0, None)
    assert jnp.allclose(loss4, ref4, rtol=1e-5, atol=1e-6), (loss4, ref4)

    print("KERNEL_OK")
</pallas_src>

<mosaic_0001>
module attributes {stable_mosaic.version = 11 : i64} {
  func.func @kernel(%arg0: i32, %arg1: memref<8x128xf32, #tpu.memory_space<vmem>>, %arg2: memref<8x1xi32, #tpu.memory_space<vmem>>, %arg3: memref<1x8x128xf32, #tpu.memory_space<vmem>>) attributes {dimension_semantics = [#tpu.dimension_semantics<parallel>], iteration_bounds = array<i64: 1>, scalar_prefetch = 0 : i64, scratch_operands = 0 : i64, tpu.core_type = #tpu.core_type<tc>, window_params = [{transform_indices = @transform_0, window_bounds = array<i64: 8, 128>}, {transform_indices = @transform_1, window_bounds = array<i64: 8, 1>}, {transform_indices = @transform_2, window_bounds = array<i64: 1, 8, 128>}]} {
    %c0 = arith.constant 0 : index
    %c0_0 = arith.constant 0 : index
    %0 = vector.load %arg2[%c0, %c0_0] : memref<8x1xi32, #tpu.memory_space<vmem>>, vector<8x1xi32>
    %1 = tpu.iota {dimensions = array<i32: 1>} : vector<8x128xi32>
    %2 = vector.broadcast %0 : vector<8x1xi32> to vector<8x128xi32>
    %3 = arith.cmpi eq, %1, %2 : vector<8x128xi32>
    %c0_1 = arith.constant 0 : index
    %c0_2 = arith.constant 0 : index
    %4 = vector.load %arg1[%c0_1, %c0_2] : memref<8x128xf32, #tpu.memory_space<vmem>>, vector<8x128xf32>
    %cst = arith.constant dense<0xFF800000> : vector<8xf32>
    %5 = vector.multi_reduction <maximumf>, %4, %cst [1] : vector<8x128xf32> to vector<8xf32>
    %6 = vector.shape_cast %5 : vector<8xf32> to vector<8x1xf32>
    %7 = vector.broadcast %6 : vector<8x1xf32> to vector<8x128xf32>
    %8 = arith.subf %4, %7 : vector<8x128xf32>
    %cst_3 = arith.constant 0.000000e+00 : f32
    %9 = vector.broadcast %cst_3 : f32 to vector<8x128xf32>
    %10 = arith.select %3, %8, %9 : vector<8x128xi1>, vector<8x128xf32>
    %cst_4 = arith.constant dense<0.000000e+00> : vector<8xf32>
    %11 = vector.multi_reduction <add>, %10, %cst_4 [1] : vector<8x128xf32> to vector<8xf32>
    %12 = vector.shape_cast %11 : vector<8xf32> to vector<8x1xf32>
    %13 = math.exp %8 : vector<8x128xf32>
    %cst_5 = arith.constant dense<0.000000e+00> : vector<8xf32>
    %14 = vector.multi_reduction <add>, %13, %cst_5 [1] : vector<8x128xf32> to vector<8xf32>
    %15 = vector.shape_cast %14 : vector<8xf32> to vector<8x1xf32>
    %16 = math.log %15 : vector<8x1xf32>
    %17 = arith.subf %12, %16 : vector<8x1xf32>
    %cst_6 = arith.constant 0.000000e+00 : f32
    %18 = vector.broadcast %cst_6 : f32 to vector<8x1xf32>
    %19 = arith.subf %18, %17 : vector<8x1xf32>
    %cst_7 = arith.constant 0.000000e+00 : f32
    %20 = vector.broadcast %cst_7 : f32 to vector<8x1xf32>
    %21 = arith.subf %20, %19 : vector<8x1xf32>
    %22 = math.exp %21 : vector<8x1xf32>
    %cst_8 = arith.constant 1.000000e+00 : f32
    %23 = vector.broadcast %cst_8 : f32 to vector<8x1xf32>
    %24 = arith.subf %23, %22 : vector<8x1xf32>
    %cst_9 = arith.constant 0.000000e+00 : f32
    %25 = vector.broadcast %cst_9 : f32 to vector<8x1xf32>
    %26 = arith.maximumf %24, %25 : vector<8x1xf32>
    %27 = arith.mulf %26, %26 : vector<8x1xf32>
    %cst_10 = arith.constant 1.000000e+00 : f32
    %28 = vector.broadcast %cst_10 : f32 to vector<8x1xf32>
    %29 = arith.mulf %28, %27 : vector<8x1xf32>
    %30 = arith.mulf %29, %19 : vector<8x1xf32>
    %31 = vector.shape_cast %30 : vector<8x1xf32> to vector<1x8x1xf32>
    %cst_11 = arith.constant dense<0.000000e+00> : vector<1xf32>
    %32 = vector.multi_reduction <add>, %31, %cst_11 [1, 2] : vector<1x8x1xf32> to vector<1xf32>
    %33 = vector.shape_cast %32 : vector<1xf32> to vector<1x1x1xf32>
    %34 = vector.extract %33[0, 0, 0] : f32 from vector<1x1x1xf32>
    %35 = vector.broadcast %34 : f32 to vector<1x8x128xf32>
    %c0_12 = arith.constant 0 : index
    %c0_13 = arith.constant 0 : index
    %c0_14 = arith.constant 0 : index
    %36 = vector.load %arg3[%c0_12, %c0_13, %c0_14] : memref<1x8x128xf32, #tpu.memory_space<vmem>>, vector<1x8x128xf32>
    tpu.vector_store %arg3[%c0_12, %c0_13, %c0_14], %35 {strides = array<i32>} : memref<1x8x128xf32, #tpu.memory_space<vmem>>, vector<1x8x128xf32>,
    return
  }
  func.func @transform_0(%arg0: i32) -> (i32, i32) {
    %c0_i32 = arith.constant 0 : i32
    %c0_i32_0 = arith.constant 0 : i32
    return %arg0, %c0_i32 : i32, i32
  }
  func.func @transform_1(%arg0: i32) -> (i32, i32) {
    %c0_i32 = arith.constant 0 : i32
    %c0_i32_0 = arith.constant 0 : i32
    return %arg0, %c0_i32 : i32, i32
  }
  func.func @transform_2(%arg0: i32) -> (i32, i32, i32) {
    %c0_i32 = arith.constant 0 : i32
    %c0_i32_0 = arith.constant 0 : i32
    %c0_i32_1 = arith.constant 0 : i32
    return %arg0, %c0_i32, %c0_i32_0 : i32, i32, i32
  }
}

</mosaic_0001>

<bundles_post_ra>
// kernel: tpu_custom_call.1
= control target key start
LH: loop header
LB: loop body
LE: loop exit
PB: predicated region body
PF: predicated region fallthrough
CT: control target
= control target key end

     0   :  { %7 = vsyncpa [#allocation3], 0  ;;  %s234_s0 = inlined_call_operand.hbm [shape: f32[8,128], index: 0, kind: input, shape index: {}]   ;;  %s235_s1 = inlined_call_operand.hbm [shape: s32[8,1], index: 1, kind: input, shape index: {}]   ;;  %s236_s2 = inlined_call_operand.hbm [shape: f32[1,8,128], index: 2, kind: output, shape index: {}]  }
   0x1   :  { %8 = vsyncpa [#allocation6], 0 }
   0x2   :  { %9 = vsyncpa [#allocation4], 0  ;;  %s179_s9 = smov [#allocation2]   ;;  %s180_s11 = smov [#allocation5]  }
   0x3   :  { %s16_s10 = sshll.u32 %s179_s9, 4  ;;  %s26_s12 = sshll.u32 %s180_s11, 4  ;;  %s17_s10 = int_to_ptr.vmem [resolvable:$true] %s16_s10  ;;  %s27_s12 = int_to_ptr.vmem [resolvable:$true] %s26_s12 }
   0x4   :  { %s107_s15 = scalar_lea.hbm %s234_s0, 128 }
   0x5   :  { %p108_p0 = scmp.ne.s32.totalorder %s234_s0, %s107_s15  ;;  %p111_p1 = scmp.lt.u32.totalorder %s107_s15, %s234_s0 }
   0x7   :  { %p113_p2 = pnand %p111_p1, %p108_p0 }
   0x9   :  { %116 = shalt.err (!%p113_p2)
}
   0xa   :  { %s117_s20 = scalar_lea.vmem %s17_s10, 128  ;;  %p122_p4 = scmp.lt.s32.totalorder %s17_s10, %s17_s10 }
   0xb   :  { %p118_p3 = scmp.ne.s32.totalorder %s17_s10, %s117_s20  ;;  %p123_p5 = scmp.lt.s32.totalorder %s117_s20, %s117_s20 }
   0xd   :  { %p124_p6 = por %p123_p5, %p122_p4 }
   0xf   :  { %p125_p7 = pnand %p124_p6, %p118_p3 }
  0x11   :  { %128 = shalt.err (!%p125_p7)
}
  0x12   :  { %19 = dma.hbm_to_vmem [thread:$0]  %s234_s0, 128, %s17_s10, [#allocation3]  }
  0x13   :  { %s129_s25 = scalar_lea.hbm %s235_s1, 128 }
  0x14   :  { %p130_p8 = scmp.ne.s32.totalorder %s235_s1, %s129_s25  ;;  %p133_p9 = scmp.lt.u32.totalorder %s129_s25, %s235_s1 }
  0x16   :  { %p135_p10 = pnand %p133_p9, %p130_p8 }
  0x18   :  { %138 = shalt.err (!%p135_p10)
}
  0x19   :  { %s139_s30 = scalar_lea.vmem %s27_s12, 128  ;;  %p144_p12 = scmp.lt.s32.totalorder %s27_s12, %s27_s12 }
  0x1a   :  { %p140_p11 = scmp.ne.s32.totalorder %s27_s12, %s139_s30  ;;  %p145_p13 = scmp.lt.s32.totalorder %s139_s30, %s139_s30 }
  0x1c   :  { %p146_p0 = por %p145_p13, %p144_p12 }
  0x1e   :  { %p147_p1 = pnand %p146_p0, %p140_p11 }
  0x20   :  { %150 = shalt.err (!%p147_p1)
}
  0x21   :  { %29 = dma.hbm_to_vmem [thread:$0]  %s235_s1, 128, %s27_s12, [#allocation6]  }
  0x22   :  { %173 = dma.done.wait [#allocation3], 128  }
  0x23   :  { %174 = vsyncadd [#allocation3], 4294967168 }
  0x24   :  { %175 = dma.done.wait [#allocation6], 128  }
  0x25   :  { %176 = vsyncadd [#allocation6], 4294967168  ;;  %v181_v0 = vmov 0   ;;  %v43_v1 = vld [vmem:[#allocation2] sm:$0xff]  ;;  %v36_v2 = vld [vmem:[#allocation5] sm:$0xff]  ;;  %v37_v6 = vlaneseq  ;;  %vm65_vm1 = vcmask 7168  }
  0x26   :  { %100 = vset.pattern.permute.xlu0 %v181_v0  ;;  %s182_s1 = smov [#allocation7]  }
  0x27   :  { %44 = vmax.xlane.f32.xlu0 %v43_v1  ;;  %v38_v7 = vand.u32 127, %v37_v6  ;;  %s84_s4 = sshll.u32 %s182_s1, 4  ;;  %s85_s4 = int_to_ptr.vmem [resolvable:$true] %s84_s4 }
  0x28   :  { %s151_s6 = scalar_lea.vmem %s85_s4, 128  ;;  %p156_p3 = scmp.lt.s32.totalorder %s85_s4, %s85_s4 }
  0x29   :  { %p152_p2 = scmp.ne.s32.totalorder %s85_s4, %s151_s6  ;;  %p157_p4 = scmp.lt.s32.totalorder %s151_s6, %s151_s6 }
  0x2b   :  { %p158_p5 = por %p157_p4, %p156_p3 }
  0x2d   :  { %p159_p6 = pnand %p158_p5, %p152_p2 }
  0x3d   :  { %40 = vperm.xlu0 %100, %v36_v2  }
  0xb4   :  { %v45_v3 = vpop.xlane.xlu0 %44 }
  0xb5   :  { %v46_v4 = vsub.f32 %v43_v1, %v45_v3 }
  0xb7   :  { %v50_v5 = vmul.f32 1.442695, %v46_v4 }
  0xb9   :  { %101 = vpow2.f32 %v50_v5 }
  0xbc   :  { %v41_v8 = vpop.permute.xlu0 %40 }
  0xbd   :  { %vm42_vm0 = vcmp.eq.s32.totalorder %v38_v7, %v41_v8 }
  0xbe   :  { %v47_v10 = vsel %vm42_vm0, %v46_v4, 0.0 }
  0xc3   :  { %v102_v9 = vpop.eup %101 }
  0xc4   :  { %52 = vadd.xlane.f32.xlu1 %v102_v9 }
  0xc8   :  { %48 = vadd.xlane.f32.xlu1 %v47_v10 }
 0x151   :  { %v53_v11 = vpop.xlane.xlu1 %52 }
 0x152   :  { %103 = vlog2.f32 %v53_v11 }
 0x155   :  { %v49_v14 = vpop.xlane.xlu1 %48 }
 0x15c   :  { %v104_v12 = vpop.eup %103 }
 0x15d   :  { %v55_v13 = vmul.f32 0.6931472, %v104_v12 }
 0x15f   :  { %v56_v15 = vsub.f32 %v49_v14, %v55_v13 }
 0x161   :  { %v57_v16 = vsub.f32 0.0, %v56_v15 }
 0x163   :  { %v58_v17 = vsub.f32 0.0, %v57_v16 }
 0x165   :  { %v59_v18 = vmul.f32 1.442695, %v58_v17 }
 0x167   :  { %105 = vpow2.f32 %v59_v18 }
 0x171   :  { %v106_v19 = vpop.eup %105 }
 0x172   :  { %v61_v20 = vsub.f32 1.0, %v106_v19 }
 0x174   :  { %v62_v21 = vmax.f32 %v61_v20, 0.0 }
 0x176   :  { %v63_v22 = vmul.f32 %v62_v21, %v62_v21 }
 0x178   :  { %v64_v23 = vmul.f32 %v63_v22, %v57_v16 }
 0x17a   :  { %v66_v24 = vsel %vm65_vm1, %v64_v23, 0.0 }
 0x17b   :  { %67 = vadd.xlane.f32.xlu1 %v66_v24 }
 0x208   :  { %v68_v25 = vpop.xlane.xlu1 %67 }
 0x209   :  { %v69_v26 = vrot.slane %v68_v25, 4 }
 0x20b   :  { %v70_v27 = vadd.f32 %v69_v26, %v68_v25 }
 0x20d   :  { %v71_v28 = vrot.slane %v70_v27, 2 }
 0x20f   :  { %v72_v29 = vadd.f32 %v71_v28, %v70_v27 }
 0x211   :  { %v73_v30 = vrot.slane %v72_v29, 1 }
 0x213   :  { %v74_v31 = vadd.f32 %v73_v30, %v72_v29 }
 0x215   :  { %94 = vpush %v74_v31 }
 0x246   :  { %s95_s5 = spop %94 }
 0x247   :  { %v76_v32 = vstv %s95_s5 }
 0x248   :  { %77 = vst [vmem:[#allocation7] sm:$0xff] %v76_v32 }
 0x249   :  { %162 = shalt.err (!%p159_p6)
}
 0x24a   :  { %s163_s9 = scalar_lea.hbm %s236_s2, 128 }
 0x24b   :  { %p164_p7 = scmp.ne.s32.totalorder %s236_s2, %s163_s9  ;;  %p167_p8 = scmp.lt.u32.totalorder %s163_s9, %s236_s2 }
 0x24d   :  { %p169_p9 = pnand %p167_p8, %p164_p7 }
 0x24f   :  { %172 = shalt.err (!%p169_p9)
}
 0x250   :  { %87 = dma.vmem_to_hbm [thread:$0]  %s85_s4, 128, %s236_s2, [#allocation4]  }
 0x251   :  { %177 = dma.done.wait [#allocation4], 128  }
 0x252   :  { %178 = vsyncadd [#allocation4], 4294967168 }
 0x253   :  { %91 = vsyncpa [#allocation3], 1 }
 0x254   :  { %92 = vsyncpa [#allocation6], 1 }
 0x255   :  { %93 = vsyncpa [#allocation4], 1 }

</bundles_post_ra>
